<compile_context>
chip_gen: v6e
topology: v6e:2x2x1
jax: 0.10.0
libtpu: 0.0.40
codegen_flags: <defaults>
</compile_context>

<pallas_src>
import functools

import jax
import jax.numpy as jnp
from jax.experimental import pallas as pl
from jax.experimental.pallas import tpu as pltpu


def _apply_positivity(y, positivity):
    if positivity == "exp":
        return jnp.exp(y)
    if positivity == "sq":
        return y * y
    if positivity == "abs":
        return jnp.abs(y)
    return y  # 'none'


def tpnet_kernel(x_ref, w1_ref, b1_ref, w2_ref, b2_ref, o_ref, h_acc,
                 *, E, H, O, positivity):
    """Grid = (B tiles, K tiles). K (= in_dim contraction) is the reduction axis."""
    k = pl.program_id(1)

    @pl.when(k == 0)
    def _():
        h_acc[...] = jnp.zeros_like(h_acc)

    # Encoder partial product on the MXU: (tb, tk) @ (tk, E*H), f32 accumulate.
    h_acc[...] += jnp.dot(x_ref[...], w1_ref[...],
                          preferred_element_type=jnp.float32)

    @pl.when(k == pl.num_programs(1) - 1)
    def _():
        h = h_acc[...] + b1_ref[...].astype(jnp.float32)      # (tb, E*H) f32
        w2 = w2_ref[...]                                      # (H, O)
        b2 = b2_ref[...].astype(jnp.float32)                  # (1, O)
        cols = []
        for e in range(E):                                    # E is small & static
            he = h[:, e * H:(e + 1) * H].astype(w2.dtype)     # (tb, H)
            ye = jnp.dot(he, w2,
                         preferred_element_type=jnp.float32) + b2
            cols.append(ye)                                   # (tb, O)
        y = jnp.concatenate(cols, axis=-1) if E > 1 else cols[0]   # (tb, E*O)
        o_ref[...] = _apply_positivity(y, positivity).astype(o_ref.dtype)


def tensor_param_net_forward(x, w1, b1, w2, b2, *, out_dim_encoder, hidden_dim,
                             out_dim_decoder, positivity="exp",
                             block_b=256, block_k=512):
    """x: (B, in_dim). w1: (in_dim, E*H) (transposed torch weight), b1: (E*H,),
    w2: (H, O) (transposed torch weight), b2: (O,).
    Returns (B, out_dim_encoder, out_dim_decoder)."""
    B, D = x.shape
    E, H, O = out_dim_encoder, hidden_dim, out_dim_decoder
    assert w1.shape == (D, E * H)
    assert b1.shape == (E * H,)
    assert w2.shape == (H, O)
    assert b2.shape == (O,)

    # Tile B (parallel axis) and the contraction dim D (reduction axis).
    tb = block_b if (B > block_b and B % block_b == 0) else B
    tk = block_k if (D > block_k and D % block_k == 0) else D
    nb, nk = B // tb, D // tk

    b1_2d = b1.reshape(1, E * H)
    b2_2d = b2.reshape(1, O)

    kernel = functools.partial(tpnet_kernel, E=E, H=H, O=O,
                               positivity=positivity)

    flops = 2 * B * D * E * H + 2 * B * E * H * O
    transcendentals = B * E * O if positivity == "exp" else 0
    bytes_accessed = x.dtype.itemsize * (B * D) \
        + w1.dtype.itemsize * (D * E * H + E * H) \
        + w2.dtype.itemsize * (H * O + O) \
        + x.dtype.itemsize * (B * E * O)

    out2d = pl.pallas_call(
        kernel,
        out_shape=jax.ShapeDtypeStruct((B, E * O), x.dtype),
        grid_spec=pltpu.PrefetchScalarGridSpec(
            num_scalar_prefetch=0,
            grid=(nb, nk),
            in_specs=[
                pl.BlockSpec((tb, tk), lambda b, k: (b, k)),       # x
                pl.BlockSpec((tk, E * H), lambda b, k: (k, 0)),    # W1
                pl.BlockSpec((1, E * H), lambda b, k: (0, 0)),     # b1
                pl.BlockSpec((H, O), lambda b, k: (0, 0)),         # W2 (small, direct)
                pl.BlockSpec((1, O), lambda b, k: (0, 0)),         # b2
            ],
            out_specs=pl.BlockSpec((tb, E * O), lambda b, k: (b, 0)),
            scratch_shapes=[pltpu.VMEM((tb, E * H), jnp.float32)],
        ),
        compiler_params=pltpu.CompilerParams(
            dimension_semantics=("parallel", "arbitrary")),
        cost_estimate=pl.CostEstimate(flops=flops,
                                      transcendentals=transcendentals,
                                      bytes_accessed=bytes_accessed),
    )(x, w1, b1_2d, w2, b2_2d)

    return out2d.reshape(B, E, O)


def _reference(x, w1, b1, w2, b2, E, H, O, positivity="exp"):
    h = x @ w1 + b1                       # (B, E*H)
    h = h.reshape(x.shape[0], E, H)
    y = jnp.einsum('beh,ho->beo', h, w2) + b2
    return {"exp": jnp.exp, "sq": lambda v: v * v, "abs": jnp.abs,
            "none": lambda v: v}[positivity](y)


if __name__ == "__main__":
    # Small config consistent with TensorParamNetConfig fields.
    B = 8
    in_dim = 128
    hidden_dim = 128
    out_dim_encoder = 4
    out_dim_decoder = 8

    key = jax.random.PRNGKey(0)
    kx, kw1, kb1, kw2, kb2 = jax.random.split(key, 5)

    x = jax.random.normal(kx, (B, in_dim), dtype=jnp.float32)

    # Deterministic parameter init (PyTorch-Linear-like uniform bounds).
    bound1 = 1.0 / jnp.sqrt(in_dim)
    w1 = jax.random.uniform(kw1, (in_dim, out_dim_encoder * hidden_dim),
                            minval=-bound1, maxval=bound1, dtype=jnp.float32)
    b1 = jax.random.uniform(kb1, (out_dim_encoder * hidden_dim,),
                            minval=-bound1, maxval=bound1, dtype=jnp.float32)
    bound2 = 1.0 / jnp.sqrt(hidden_dim)
    w2 = jax.random.uniform(kw2, (hidden_dim, out_dim_decoder),
                            minval=-bound2, maxval=bound2, dtype=jnp.float32)
    b2 = jax.random.uniform(kb2, (out_dim_decoder,),
                            minval=-bound2, maxval=bound2, dtype=jnp.float32)

    fwd = functools.partial(tensor_param_net_forward,
                            out_dim_encoder=out_dim_encoder,
                            hidden_dim=hidden_dim,
                            out_dim_decoder=out_dim_decoder,
                            positivity="exp")
    out = jax.jit(fwd)(x, w1, b1, w2, b2)
    out = jax.block_until_ready(out)

    ref = _reference(x, w1, b1, w2, b2, out_dim_encoder, hidden_dim,
                     out_dim_decoder)
    assert out.shape == (B, out_dim_encoder, out_dim_decoder)
    assert jnp.allclose(out, ref, rtol=1e-5, atol=1e-5), "mismatch vs reference"

    print("KERNEL_OK")
</pallas_src>

<mosaic_0001>
module attributes {stable_mosaic.version = 11 : i64} {
  func.func @tpnet_kernel(%arg0: i32, %arg1: i32, %arg2: memref<8x128xf32, #tpu.memory_space<vmem>>, %arg3: memref<128x512xf32, #tpu.memory_space<vmem>>, %arg4: memref<1x512xf32, #tpu.memory_space<vmem>>, %arg5: memref<128x8xf32, #tpu.memory_space<vmem>>, %arg6: memref<1x8xf32, #tpu.memory_space<vmem>>, %arg7: memref<8x32xf32, #tpu.memory_space<vmem>>, %arg8: memref<8x512xf32, #tpu.memory_space<vmem>>) attributes {dimension_semantics = [#tpu.dimension_semantics<parallel>, #tpu.dimension_semantics<arbitrary>], iteration_bounds = array<i64: 1, 1>, scalar_prefetch = 0 : i64, scratch_operands = 1 : i64, tpu.core_type = #tpu.core_type<tc>, window_params = [{transform_indices = @transform_0, window_bounds = array<i64: 8, 128>}, {transform_indices = @transform_1, window_bounds = array<i64: 128, 512>}, {pipeline_mode = #tpu.pipeline_mode<synchronous>, transform_indices = @transform_2, window_bounds = array<i64: 1, 512>}, {pipeline_mode = #tpu.pipeline_mode<synchronous>, transform_indices = @transform_3, window_bounds = array<i64: 128, 8>}, {pipeline_mode = #tpu.pipeline_mode<synchronous>, transform_indices = @transform_4, window_bounds = array<i64: 1, 8>}, {transform_indices = @transform_5, window_bounds = array<i64: 8, 32>}]} {
    %c0_i32 = arith.constant 0 : i32
    %0 = arith.cmpi eq, %arg1, %c0_i32 : i32
    %1 = arith.extui %0 : i1 to i32
    %c0_i32_0 = arith.constant 0 : i32
    %2 = arith.cmpi ne, %1, %c0_i32_0 : i32
    scf.if %2 {
      %cst_10 = arith.constant 0.000000e+00 : f32
      %12 = vector.broadcast %cst_10 : f32 to vector<8x512xf32>
      %c0_11 = arith.constant 0 : index
      %c0_12 = arith.constant 0 : index
      %13 = vector.load %arg8[%c0_11, %c0_12] : memref<8x512xf32, #tpu.memory_space<vmem>>, vector<8x512xf32>
      tpu.vector_store %arg8[%c0_11, %c0_12], %12 {strides = array<i32>} : memref<8x512xf32, #tpu.memory_space<vmem>>, vector<8x512xf32>,
    } else {
    }
    %c0 = arith.constant 0 : index
    %c0_1 = arith.constant 0 : index
    %3 = vector.load %arg8[%c0, %c0_1] : memref<8x512xf32, #tpu.memory_space<vmem>>, vector<8x512xf32>
    %c0_2 = arith.constant 0 : index
    %c0_3 = arith.constant 0 : index
    %4 = vector.load %arg2[%c0_2, %c0_3] : memref<8x128xf32, #tpu.memory_space<vmem>>, vector<8x128xf32>
    %c0_4 = arith.constant 0 : index
    %c0_5 = arith.constant 0 : index
    %5 = vector.load %arg3[%c0_4, %c0_5] : memref<128x512xf32, #tpu.memory_space<vmem>>, vector<128x512xf32>
    %cst = arith.constant dense<0.000000e+00> : vector<8x512xf32>
    %6 = tpu.matmul %4, %5, %cst {dimension_numbers = #tpu.dot_dimension_numbers<[1], [0], [0], [1], [0, 0, 1, 1], [], []>} : vector<8x128xf32>, vector<128x512xf32>, vector<8x512xf32> -> vector<8x512xf32>
    %7 = arith.addf %3, %6 : vector<8x512xf32>
    %c0_6 = arith.constant 0 : index
    %c0_7 = arith.constant 0 : index
    %8 = vector.load %arg8[%c0_6, %c0_7] : memref<8x512xf32, #tpu.memory_space<vmem>>, vector<8x512xf32>
    tpu.vector_store %arg8[%c0_6, %c0_7], %7 {strides = array<i32>} : memref<8x512xf32, #tpu.memory_space<vmem>>, vector<8x512xf32>,
    %c0_i32_8 = arith.constant 0 : i32
    %9 = arith.cmpi eq, %arg1, %c0_i32_8 : i32
    %10 = arith.extui %9 : i1 to i32
    %c0_i32_9 = arith.constant 0 : i32
    %11 = arith.cmpi ne, %10, %c0_i32_9 : i32
    scf.if %11 {
      %c0_10 = arith.constant 0 : index
      %c0_11 = arith.constant 0 : index
      %12 = vector.load %arg8[%c0_10, %c0_11] : memref<8x512xf32, #tpu.memory_space<vmem>>, vector<8x512xf32>
      %c0_12 = arith.constant 0 : index
      %c0_13 = arith.constant 0 : index
      %13 = vector.load %arg4[%c0_12, %c0_13] : memref<1x512xf32, #tpu.memory_space<vmem>>, vector<1x512xf32>
      %14 = vector.broadcast %13 : vector<1x512xf32> to vector<8x512xf32>
      %15 = arith.addf %12, %14 : vector<8x512xf32>
      %c0_14 = arith.constant 0 : index
      %c0_15 = arith.constant 0 : index
      %16 = vector.load %arg5[%c0_14, %c0_15] : memref<128x8xf32, #tpu.memory_space<vmem>>, vector<128x8xf32>
      %c0_16 = arith.constant 0 : index
      %c0_17 = arith.constant 0 : index
      %17 = vector.load %arg6[%c0_16, %c0_17] : memref<1x8xf32, #tpu.memory_space<vmem>>, vector<1x8xf32>
      %18 = vector.extract_strided_slice %15 {offsets = [0, 0], sizes = [8, 128], strides = [1, 1]} : vector<8x512xf32> to vector<8x128xf32>
      %cst_18 = arith.constant dense<0.000000e+00> : vector<8x8xf32>
      %19 = tpu.matmul %18, %16, %cst_18 {dimension_numbers = #tpu.dot_dimension_numbers<[1], [0], [0], [1], [0, 0, 1, 1], [], []>} : vector<8x128xf32>, vector<128x8xf32>, vector<8x8xf32> -> vector<8x8xf32>
      %20 = vector.broadcast %17 : vector<1x8xf32> to vector<8x8xf32>
      %21 = arith.addf %19, %20 : vector<8x8xf32>
      %22 = vector.extract_strided_slice %15 {offsets = [0, 128], sizes = [8, 128], strides = [1, 1]} : vector<8x512xf32> to vector<8x128xf32>
      %cst_19 = arith.constant dense<0.000000e+00> : vector<8x8xf32>
      %23 = tpu.matmul %22, %16, %cst_19 {dimension_numbers = #tpu.dot_dimension_numbers<[1], [0], [0], [1], [0, 0, 1, 1], [], []>} : vector<8x128xf32>, vector<128x8xf32>, vector<8x8xf32> -> vector<8x8xf32>
      %24 = vector.broadcast %17 : vector<1x8xf32> to vector<8x8xf32>
      %25 = arith.addf %23, %24 : vector<8x8xf32>
      %26 = vector.extract_strided_slice %15 {offsets = [0, 256], sizes = [8, 128], strides = [1, 1]} : vector<8x512xf32> to vector<8x128xf32>
      %cst_20 = arith.constant dense<0.000000e+00> : vector<8x8xf32>
      %27 = tpu.matmul %26, %16, %cst_20 {dimension_numbers = #tpu.dot_dimension_numbers<[1], [0], [0], [1], [0, 0, 1, 1], [], []>} : vector<8x128xf32>, vector<128x8xf32>, vector<8x8xf32> -> vector<8x8xf32>
      %28 = vector.broadcast %17 : vector<1x8xf32> to vector<8x8xf32>
      %29 = arith.addf %27, %28 : vector<8x8xf32>
      %30 = vector.extract_strided_slice %15 {offsets = [0, 384], sizes = [8, 128], strides = [1, 1]} : vector<8x512xf32> to vector<8x128xf32>
      %cst_21 = arith.constant dense<0.000000e+00> : vector<8x8xf32>
      %31 = tpu.matmul %30, %16, %cst_21 {dimension_numbers = #tpu.dot_dimension_numbers<[1], [0], [0], [1], [0, 0, 1, 1], [], []>} : vector<8x128xf32>, vector<128x8xf32>, vector<8x8xf32> -> vector<8x8xf32>
      %32 = vector.broadcast %17 : vector<1x8xf32> to vector<8x8xf32>
      %33 = arith.addf %31, %32 : vector<8x8xf32>
      %34 = tpu.concatenate %21, %25, %29, %33 in 1 : vector<8x8xf32>, vector<8x8xf32>, vector<8x8xf32>, vector<8x8xf32> -> vector<8x32xf32>
      %35 = math.exp %34 : vector<8x32xf32>
      %c0_22 = arith.constant 0 : index
      %c0_23 = arith.constant 0 : index
      %36 = vector.load %arg7[%c0_22, %c0_23] : memref<8x32xf32, #tpu.memory_space<vmem>>, vector<8x32xf32>
      tpu.vector_store %arg7[%c0_22, %c0_23], %35 {strides = array<i32>} : memref<8x32xf32, #tpu.memory_space<vmem>>, vector<8x32xf32>,
    } else {
    }
    return
  }
  func.func @transform_0(%arg0: i32, %arg1: i32) -> (i32, i32) {
    %c0_i32 = arith.constant 0 : i32
    return %arg0, %arg1 : i32, i32
  }
  func.func @transform_1(%arg0: i32, %arg1: i32) -> (i32, i32) {
    %c0_i32 = arith.constant 0 : i32
    %c0_i32_0 = arith.constant 0 : i32
    return %arg1, %c0_i32 : i32, i32
  }
  func.func @transform_2(%arg0: i32, %arg1: i32) -> (i32, i32) {
    %c0_i32 = arith.constant 0 : i32
    %c0_i32_0 = arith.constant 0 : i32
    %c0_i32_1 = arith.constant 0 : i32
    return %c0_i32, %c0_i32_0 : i32, i32
  }
  func.func @transform_3(%arg0: i32, %arg1: i32) -> (i32, i32) {
    %c0_i32 = arith.constant 0 : i32
    %c0_i32_0 = arith.constant 0 : i32
    %c0_i32_1 = arith.constant 0 : i32
    return %c0_i32, %c0_i32_0 : i32, i32
  }
  func.func @transform_4(%arg0: i32, %arg1: i32) -> (i32, i32) {
    %c0_i32 = arith.constant 0 : i32
    %c0_i32_0 = arith.constant 0 : i32
    %c0_i32_1 = arith.constant 0 : i32
    return %c0_i32, %c0_i32_0 : i32, i32
  }
  func.func @transform_5(%arg0: i32, %arg1: i32) -> (i32, i32) {
    %c0_i32 = arith.constant 0 : i32
    %c0_i32_0 = arith.constant 0 : i32
    return %arg0, %c0_i32 : i32, i32
  }
}

</mosaic_0001>

<bundles_post_ra>
// kernel: tensor_param_net_forward.1
= control target key start
LH: loop header
LB: loop body
LE: loop exit
PB: predicated region body
PF: predicated region fallthrough
CT: control target
= control target key end

     0   :  { %10 = vsyncpa [#allocation4], 0  ;;  %s865_s18 = smov [#allocation3]   ;;  %s1148_s0 = inlined_call_operand.vmem [shape: f32[8,128], index: 0, kind: input, shape index: {}]   ;;  %s1149_s1 = inlined_call_operand.hbm [shape: f32[128,512], index: 1, kind: input, shape index: {}]   ;;  %s1150_s2 = inlined_call_operand.vmem [shape: f32[1,512], index: 2, kind: input, shape index: {}]   ;;  %s1151_s3 = inlined_call_operand.vmem [shape: f32[128,8], index: 3, kind: input, shape index: {}]   ;;  %s1152_s4 = inlined_call_operand.vmem [shape: f32[1,8], index: 4, kind: input, shape index: {}]   ;;  %s1153_s5 = inlined_call_operand.vmem [shape: f32[8,32], index: 5, kind: output, shape index: {}]  }
   0x1   :  { %s18_s19 = sshll.u32 %s865_s18, 4  ;;  %s19_s19 = int_to_ptr.vmem [resolvable:$true] %s18_s19 }
   0x2   :  { %s851_s20 = scalar_lea.vmem %s19_s19, 8192  ;;  %p856_p1 = scmp.lt.s32.totalorder %s19_s19, %s19_s19 }
   0x3   :  { %p852_p0 = scmp.ne.s32.totalorder %s19_s19, %s851_s20  ;;  %p857_p2 = scmp.lt.s32.totalorder %s851_s20, %s851_s20 }
   0x5   :  { %p858_p3 = por %p857_p2, %p856_p1 }
   0x7   :  { %p859_p4 = pnand %p858_p3, %p852_p0 }
   0x9   :  { %862 = shalt.err (!%p859_p4)
}
   0xa   :  { %s866_s21 = smov 512   ;;  %s867_s22 = smov 32  }
   0xb   :  { %24 = dma.hbm_to_vmem [thread:$0]  %s1149_s1, 8192, %s19_s19, [#allocation4], %s866_s21, %s866_s21, %s867_s22  }
   0xc   :  { %863 = dma.done.wait [#allocation4], 8192  }
   0xd   :  { %864 = vsyncadd [#allocation4], 4294959104  ;;  %v868_v0 = vmov 0.0   ;;  %v108_v1 = vld [vmem:[#allocation3 + $0x1e8] sm:$0xff]  ;;  %v107_v2 = vld [vmem:[#allocation3 + $0x1e0] sm:$0xff]  ;;  %vm869_vm0 = vmmov 0  }
   0xe   :  { %175 = vmatprep.mubr.f32.mxu0 %v868_v0  ;;  %246 = vmatprep.mubr.f32.mxu1 %v868_v0  ;;  %v104_v3 = vld [vmem:[#allocation3 + $0x1c8] sm:$0xff]  ;;  %v103_v4 = vld [vmem:[#allocation3 + $0x1c0] sm:$0xff]  ;;  %v110_v14 = vld [vmem:[#allocation3 + $0x1f8] sm:$0xff]  ;;  %s870_s7 = smov 8   ;;  %s871_s8 = smov 16   ;;  %vm609_vm1 = vcmask 64512  }
   0xf   :  { %111 = vmatprep.subr.mxu0 %v108_v1  ;;  %v100_v5 = vld [vmem:[#allocation3 + $0x1a8] sm:$0xff]  ;;  %v99_v6 = vld [vmem:[#allocation3 + $0x1a0] sm:$0xff]  ;;  %v109_v15 = vld [vmem:[#allocation3 + $0x1f0] sm:$0xff]  ;;  %182 = vmatprep.subr.mxu1 %v110_v14  ;;  %s872_s9 = smov 24   ;;  %vm611_vm2 = vcmask 130048   ;;  %vm613_vm3 = vcmask 195584  }
  0x10   :  { %112 = vmatpush1.msra.mxu0 %v107_v2  ;;  %v96_v7 = vld [vmem:[#allocation3 + $0x188] sm:$0xff]  ;;  %v95_v8 = vld [vmem:[#allocation3 + $0x180] sm:$0xff]  ;;  %v106_v17 = vld [vmem:[#allocation3 + $0x1d8] sm:$0xff]  ;;  %183 = vmatpush1.msra.mxu1 %v109_v15  ;;  %vm617_vm4 = vcmask 261120  }
  0x11   :  { %113 = vmatprep.subr.mxu0 %v104_v3  ;;  %v92_v9 = vld [vmem:[#allocation3 + $0x168] sm:$0xff]  ;;  %v91_v10 = vld [vmem:[#allocation3 + $0x160] sm:$0xff]  ;;  %v105_v19 = vld [vmem:[#allocation3 + $0x1d0] sm:$0xff]  ;;  %184 = vmatprep.subr.mxu1 %v106_v17 }
  0x12   :  { %114 = vmatpush1.msra.mxu0 %v103_v4  ;;  %v88_v11 = vld [vmem:[#allocation3 + $0x148] sm:$0xff]  ;;  %v87_v12 = vld [vmem:[#allocation3 + $0x140] sm:$0xff]  ;;  %v102_v20 = vld [vmem:[#allocation3 + $0x1b8] sm:$0xff]  ;;  %185 = vmatpush1.msra.mxu1 %v105_v19  ;;  %v270_v19 = vlaneseq }
  0x13   :  { %115 = vmatprep.subr.mxu0 %v100_v5  ;;  %v84_v13 = vld [vmem:[#allocation3 + $0x128] sm:$0xff]  ;;  %v83_v16 = vld [vmem:[#allocation3 + $0x120] sm:$0xff]  ;;  %v101_v22 = vld [vmem:[#allocation3 + $0x1b0] sm:$0xff]  ;;  %186 = vmatprep.subr.mxu1 %v102_v20 }
  0x14   :  { %116 = vmatpush1.msra.mxu0 %v99_v6  ;;  %v80_v18 = vld [vmem:[#allocation3 + $0x108] sm:$0xff]  ;;  %v79_v21 = vld [vmem:[#allocation3 + $0x100] sm:$0xff]  ;;  %v98_v24 = vld [vmem:[#allocation3 + $0x198] sm:$0xff]  ;;  %187 = vmatpush1.msra.mxu1 %v101_v22  ;;  %v1061_v20 = vshrl.u32 %v270_v19, 7 }
  0x15   :  { %117 = vmatprep.subr.mxu0 %v96_v7  ;;  %v76_v23 = vld [vmem:[#allocation3 + $0xe8] sm:$0xff]  ;;  %v75_v25 = vld [vmem:[#allocation3 + $0xe0] sm:$0xff]  ;;  %v97_v26 = vld [vmem:[#allocation3 + $0x190] sm:$0xff]  ;;  %188 = vmatprep.subr.mxu1 %v98_v24 }
  0x16   :  { %118 = vmatpush1.msra.mxu0 %v95_v8  ;;  %v72_v27 = vld [vmem:[#allocation3 + $0xc8] sm:$0xff]  ;;  %v94_v28 = vld [vmem:[#allocation3 + $0x178] sm:$0xff]  ;;  %v71_v29 = vld [vmem:[#allocation3 + $0xc0] sm:$0xff]  ;;  %189 = vmatpush1.msra.mxu1 %v97_v26 }
  0x17   :  { %119 = vmatprep.subr.mxu0 %v92_v9  ;;  %v93_v30 = vld [vmem:[#allocation3 + $0x170] sm:$0xff]  ;;  %v68_v31 = vld [vmem:[#allocation3 + $0xa8] sm:$0xff]  ;;  %v90_v32 = vld [vmem:[#allocation3 + $0x158] sm:$0xff]  ;;  %190 = vmatprep.subr.mxu1 %v94_v28 }
  0x18   :  { %120 = vmatpush1.msra.mxu0 %v91_v10  ;;  %v67_v33 = vld [vmem:[#allocation3 + $0xa0] sm:$0xff]  ;;  %v89_v34 = vld [vmem:[#allocation3 + $0x150] sm:$0xff]  ;;  %v64_v35 = vld [vmem:[#allocation3 + $0x88] sm:$0xff]  ;;  %191 = vmatpush1.msra.mxu1 %v93_v30  ;;  %v280_v30 = vsub.s32 2, %v1061_v20 }
  0x19   :  { %121 = vmatprep.subr.mxu0 %v88_v11  ;;  %v86_v36 = vld [vmem:[#allocation3 + $0x138] sm:$0xff]  ;;  %v63_v37 = vld [vmem:[#allocation3 + $0x80] sm:$0xff]  ;;  %192 = vmatprep.subr.mxu1 %v90_v32  ;;  %v85_v38 = vld [vmem:[#allocation3 + $0x130] sm:$0xff]  ;;  %v284_v32 = vsub.s32 3, %v1061_v20 }
  0x1a   :  { %122 = vmatpush1.msra.mxu0 %v87_v12  ;;  %v60_v39 = vld [vmem:[#allocation3 + $0x68] sm:$0xff]  ;;  %193 = vmatpush1.msra.mxu1 %v89_v34  ;;  %v82_v40 = vld [vmem:[#allocation3 + $0x118] sm:$0xff]  ;;  %v59_v41 = vld [vmem:[#allocation3 + $0x60] sm:$0xff] }
  0x1b   :  { %123 = vmatprep.subr.mxu0 %v84_v13  ;;  %194 = vmatprep.subr.mxu1 %v86_v36  ;;  %v81_v42 = vld [vmem:[#allocation3 + $0x110] sm:$0xff]  ;;  %v56_v43 = vld [vmem:[#allocation3 + $0x48] sm:$0xff]  ;;  %v78_v44 = vld [vmem:[#allocation3 + $0xf8] sm:$0xff] }
  0x1c   :  { %124 = vmatpush1.msra.mxu0 %v83_v16  ;;  %195 = vmatpush1.msra.mxu1 %v85_v38  ;;  %v55_v45 = vld [vmem:[#allocation3 + $0x40] sm:$0xff]  ;;  %v77_v46 = vld [vmem:[#allocation3 + $0xf0] sm:$0xff]  ;;  %v52_v47 = vld [vmem:[#allocation3 + $0x28] sm:$0xff] }
  0x1d   :  { %125 = vmatprep.subr.mxu0 %v80_v18  ;;  %196 = vmatprep.subr.mxu1 %v82_v40  ;;  %v74_v48 = vld [vmem:[#allocation3 + $0xd8] sm:$0xff]  ;;  %v51_v49 = vld [vmem:[#allocation3 + $0x20] sm:$0xff]  ;;  %v73_v50 = vld [vmem:[#allocation3 + $0xd0] sm:$0xff] }
  0x1e   :  { %126 = vmatpush1.msra.mxu0 %v79_v21  ;;  %197 = vmatpush1.msra.mxu1 %v81_v42  ;;  %v48_v51 = vld [vmem:[#allocation3 + $0x8] sm:$0xff]  ;;  %v70_v52 = vld [vmem:[#allocation3 + $0xb8] sm:$0xff]  ;;  %v47_v53 = vld [vmem:[#allocation3] sm:$0xff]  ;;  %v272_v21 = vsub.s32 0, %v1061_v20 }
  0x1f   :  { %127 = vmatprep.subr.mxu0 %v76_v23  ;;  %198 = vmatprep.subr.mxu1 %v78_v44  ;;  %v69_v54 = vld [vmem:[#allocation3 + $0xb0] sm:$0xff]  ;;  %v46_v55 = vld [vmem:[%s1148_s0] sm:$0xff]  ;;  %v66_v56 = vld [vmem:[#allocation3 + $0x98] sm:$0xff]  ;;  %v276_v23 = vsub.s32 1, %v1061_v20 }
  0x20   :  { %128 = vmatpush1.msra.mxu0 %v75_v25  ;;  %199 = vmatpush1.msra.mxu1 %v77_v46  ;;  %v65_v57 = vld [vmem:[#allocation3 + $0x90] sm:$0xff]  ;;  %v62_v58 = vld [vmem:[#allocation3 + $0x78] sm:$0xff]  ;;  %v927_v2 = vld [vmem:[%s1151_s3 + $0x68] sm:$0xff] }
  0x21   :  { %129 = vmatprep.subr.mxu0 %v72_v27  ;;  %200 = vmatprep.subr.mxu1 %v74_v48  ;;  %v914_v59 = vld [vmem:[%s1151_s3 + $0x78] sm:$0xff]  ;;  %v61_v60 = vld [vmem:[#allocation3 + $0x70] sm:$0xff]  ;;  %v934_v5 = vld [vmem:[%s1151_s3 + $0x60] sm:$0xff] }
  0x22   :  { %130 = vmatpush1.msra.mxu0 %v71_v29  ;;  %201 = vmatpush1.msra.mxu1 %v73_v50  ;;  %v58_v61 = vld [vmem:[#allocation3 + $0x58] sm:$0xff]  ;;  %v920_v62 = vld [vmem:[%s1151_s3 + $0x70] sm:$0xff]  ;;  %v958_v9 = vld [vmem:[%s1151_s3 + $0x48] sm:$0xff] }
  0x23   :  { %131 = vmatprep.subr.mxu0 %v68_v31  ;;  %202 = vmatprep.subr.mxu1 %v70_v52  ;;  %v57_v63 = vld [vmem:[#allocation3 + $0x50] sm:$0xff]  ;;  %v54_v1 = vld [vmem:[#allocation3 + $0x38] sm:$0xff]  ;;  %v967_v10 = vld [vmem:[%s1151_s3 + $0x40] sm:$0xff] }
  0x24   :  { %132 = vmatpush1.msra.mxu0 %v67_v33  ;;  %203 = vmatpush1.msra.mxu1 %v69_v54  ;;  %v53_v3 = vld [vmem:[#allocation3 + $0x30] sm:$0xff]  ;;  %v50_v4 = vld [vmem:[#allocation3 + $0x18] sm:$0xff]  ;;  %v994_v13 = vld [vmem:[%s1151_s3 + $0x28] sm:$0xff] }
  0x25   :  { %133 = vmatprep.subr.mxu0 %v64_v35  ;;  %204 = vmatprep.subr.mxu1 %v66_v56  ;;  %v49_v6 = vld [vmem:[#allocation3 + $0x10] sm:$0xff]  ;;  %v942_v7 = vld [vmem:[%s1151_s3 + $0x58] sm:$0xff]  ;;  %v1003_v14 = vld [vmem:[%s1151_s3 + $0x20] sm:$0xff] }
  0x26   :  { %134 = vmatpush1.msra.mxu0 %v63_v37  ;;  %205 = vmatpush1.msra.mxu1 %v65_v57  ;;  %v949_v8 = vld [vmem:[%s1151_s3 + $0x50] sm:$0xff]  ;;  %v976_v11 = vld [vmem:[%s1151_s3 + $0x38] sm:$0xff]  ;;  %v1030_v17 = vld [vmem:[%s1151_s3 + $0x8] sm:$0xff] }
  0x27   :  { %135 = vmatprep.subr.mxu0 %v60_v39  ;;  %206 = vmatprep.subr.mxu1 %v62_v58  ;;  %v985_v12 = vld [vmem:[%s1151_s3 + $0x30] sm:$0xff]  ;;  %v1012_v15 = vld [vmem:[%s1151_s3 + $0x18] sm:$0xff]  ;;  %v1051_v18 = vld [vmem:[%s1151_s3] sm:$0xff] }
  0x28   :  { %136 = vmatpush1.msra.mxu0 %v59_v41  ;;  %207 = vmatpush1.msra.mxu1 %v61_v60  ;;  %v1021_v16 = vld [vmem:[%s1151_s3 + $0x10] sm:$0xff]  ;;  %v1067_v22 = vld [vmem:[%s1150_s2] sm:$0xf] }
  0x29   :  { %137 = vmatprep.subr.mxu0 %v56_v43  ;;  %208 = vmatprep.subr.mxu1 %v58_v61  ;;  %v273_v24 = vrot.slane %v1067_v22, %v272_v21  ;;  %v277_v25 = vrot.slane %v1067_v22, %v276_v23  ;;  %v281_v31 = vrot.slane %v1067_v22, %v280_v30  ;;  %v624_v38 = vld [vmem:[%s1152_s4] ss:$0 sm:$0xff] }
  0x2a   :  { %138 = vmatpush1.msra.mxu0 %v55_v45  ;;  %209 = vmatpush1.msra.mxu1 %v57_v63  ;;  %v285_v35 = vrot.slane %v1067_v22, %v284_v32 }
  0x2b   :  { %139 = vmatprep.subr.mxu0 %v52_v47  ;;  %210 = vmatprep.subr.mxu1 %v54_v1 }
  0x2c   :  { %140 = vmatpush1.msra.mxu0 %v51_v49  ;;  %211 = vmatpush1.msra.mxu1 %v53_v3 }
  0x2d   :  { %141 = vmatprep.subr.mxu0 %v48_v51  ;;  %212 = vmatprep.subr.mxu1 %v50_v4 }
  0x2e   :  { %142 = vmatpush1.msra.mxu0 %v47_v53  ;;  %213 = vmatpush1.msra.mxu1 %v49_v6 }
  0x2f   :  { %176 = vmatmul.mubr.f32.vlgmr.msra.gmra.mxu0 %v46_v55  ;;  %693 = vmatprep.subr.mxu0 %v868_v0 }
  0x30   :  { %694 = vmatpush3.msra.mxu0 %v914_v59  ;;  %247 = vmatmul.mubr.f32.vlgmr.msra.gmra.mxu1 %v46_v55 }
  0x31   :  { %695 = vmatprep.subr.mxu0 %v868_v0  ;;  %728 = vmatprep.subr.mxu1 %v868_v0 }
  0x32   :  { %696 = vmatpush3.msra.mxu0 %v920_v62  ;;  %729 = vmatpush3.msra.mxu1 %v914_v59 }
  0x33   :  { %697 = vmatprep.subr.mxu0 %v868_v0  ;;  %730 = vmatprep.subr.mxu1 %v868_v0 }
  0x34   :  { %698 = vmatpush3.msra.mxu0 %v927_v2  ;;  %731 = vmatpush3.msra.mxu1 %v920_v62 }
  0x35   :  { %699 = vmatprep.subr.mxu0 %v868_v0  ;;  %732 = vmatprep.subr.mxu1 %v868_v0 }
  0x36   :  { %700 = vmatpush3.msra.mxu0 %v934_v5  ;;  %733 = vmatpush3.msra.mxu1 %v927_v2 }
  0x37   :  { %701 = vmatprep.subr.mxu0 %v868_v0  ;;  %734 = vmatprep.subr.mxu1 %v868_v0 }
  0x38   :  { %702 = vmatpush3.msra.mxu0 %v942_v7  ;;  %735 = vmatpush3.msra.mxu1 %v934_v5 }
  0x39   :  { %703 = vmatprep.subr.mxu0 %v868_v0  ;;  %736 = vmatprep.subr.mxu1 %v868_v0 }
  0x3a   :  { %704 = vmatpush3.msra.mxu0 %v949_v8  ;;  %737 = vmatpush3.msra.mxu1 %v942_v7 }
  0x3b   :  { %705 = vmatprep.subr.mxu0 %v868_v0  ;;  %738 = vmatprep.subr.mxu1 %v868_v0 }
  0x3c   :  { %706 = vmatpush3.msra.mxu0 %v958_v9  ;;  %739 = vmatpush3.msra.mxu1 %v949_v8 }
  0x3d   :  { %707 = vmatprep.subr.mxu0 %v868_v0  ;;  %740 = vmatprep.subr.mxu1 %v868_v0 }
  0x3e   :  { %708 = vmatpush3.msra.mxu0 %v967_v10  ;;  %741 = vmatpush3.msra.mxu1 %v958_v9 }
  0x3f   :  { %709 = vmatprep.subr.mxu0 %v868_v0  ;;  %742 = vmatprep.subr.mxu1 %v868_v0 }
  0x40   :  { %710 = vmatpush3.msra.mxu0 %v976_v11  ;;  %743 = vmatpush3.msra.mxu1 %v967_v10 }
  0x41   :  { %711 = vmatprep.subr.mxu0 %v868_v0  ;;  %744 = vmatprep.subr.mxu1 %v868_v0 }
  0x42   :  { %712 = vmatpush3.msra.mxu0 %v985_v12  ;;  %745 = vmatpush3.msra.mxu1 %v976_v11 }
  0x43   :  { %713 = vmatprep.subr.mxu0 %v868_v0  ;;  %746 = vmatprep.subr.mxu1 %v868_v0 }
  0x44   :  { %714 = vmatpush3.msra.mxu0 %v994_v13  ;;  %747 = vmatpush3.msra.mxu1 %v985_v12 }
  0x45   :  { %715 = vmatprep.subr.mxu0 %v868_v0  ;;  %748 = vmatprep.subr.mxu1 %v868_v0 }
  0x46   :  { %716 = vmatpush3.msra.mxu0 %v1003_v14  ;;  %749 = vmatpush3.msra.mxu1 %v994_v13 }
  0x47   :  { %717 = vmatprep.subr.mxu0 %v868_v0  ;;  %750 = vmatprep.subr.mxu1 %v868_v0 }
  0x48   :  { %718 = vmatpush3.msra.mxu0 %v1012_v15  ;;  %751 = vmatpush3.msra.mxu1 %v1003_v14 }
  0x49   :  { %719 = vmatprep.subr.mxu0 %v868_v0  ;;  %752 = vmatprep.subr.mxu1 %v868_v0 }
  0x4a   :  { %720 = vmatpush3.msra.mxu0 %v1021_v16  ;;  %753 = vmatpush3.msra.mxu1 %v1012_v15 }
  0x4b   :  { %721 = vmatprep.subr.mxu0 %v868_v0  ;;  %754 = vmatprep.subr.mxu1 %v868_v0 }
  0x4c   :  { %722 = vmatpush3.msra.mxu0 %v1030_v17  ;;  %755 = vmatpush3.msra.mxu1 %v1021_v16 }
  0x4d   :  { %723 = vmatprep.subr.mxu0 %v868_v0  ;;  %756 = vmatprep.subr.mxu1 %v868_v0 }
  0x4e   :  { %757 = vmatpush3.msra.mxu1 %v1030_v17  ;;  %724 = vmatpush3.msra.mxu0 %v1051_v18 }
  0x4f   :  { %758 = vmatprep.subr.mxu1 %v868_v0  ;;  %725 = vmatprep.mubr.msk.f32.mxu0 %vm869_vm0, %v868_v0 }
  0x50   :  { %759 = vmatpush3.msra.mxu1 %v1051_v18  ;;  %763 = vmatprep.subr.mxu0 %v868_v0 }
  0x51   :  { %760 = vmatprep.mubr.msk.f32.mxu1 %vm869_vm0, %v868_v0  ;;  %798 = vmatprep.subr.mxu1 %v868_v0 }
  0xef   :  { %v177_v26 = vpop.f32.mrf.mxu0 }
  0xf0   :  { %v290_v27 = vadd.f32 %v273_v24, %v177_v26  ;;  %v248_v33 = vpop.f32.mrf.mxu1 }
  0xf1   :  { %v179_v28 = vpop.f32.mrf.mxu0  ;;  %v292_v34 = vadd.f32 %v281_v31, %v248_v33 }
  0xf2   :  { %v291_v29 = vadd.f32 %v277_v25, %v179_v28  ;;  %726 = vmatmul.mubr.f32.vlgmr.msra.gmra.mxu0 %v290_v27  ;;  %v250_v36 = vpop.f32.mrf.mxu1 }
  0xf3   :  { %764 = vmatpush3.msra.mxu0 %v914_v59  ;;  %795 = vmatprep.mubr.msk.f32.mxu0 %vm869_vm0, %v868_v0  ;;  %v293_v37 = vadd.f32 %v285_v35, %v250_v36 }
  0xf4   :  { %765 = vmatprep.subr.mxu0 %v868_v0  ;;  %761 = vmatmul.mubr.f32.vlgmr.msra.gmra.mxu1 %v291_v29 }
  0xf5   :  { %766 = vmatpush3.msra.mxu0 %v920_v62  ;;  %799 = vmatpush3.msra.mxu1 %v914_v59 }
  0xf6   :  { %767 = vmatprep.subr.mxu0 %v868_v0  ;;  %800 = vmatprep.subr.mxu1 %v868_v0 }
  0xf7   :  { %768 = vmatpush3.msra.mxu0 %v927_v2  ;;  %801 = vmatpush3.msra.mxu1 %v920_v62 }
  0xf8   :  { %769 = vmatprep.subr.mxu0 %v868_v0  ;;  %802 = vmatprep.subr.mxu1 %v868_v0 }
  0xf9   :  { %770 = vmatpush3.msra.mxu0 %v934_v5  ;;  %803 = vmatpush3.msra.mxu1 %v927_v2 }
  0xfa   :  { %771 = vmatprep.subr.mxu0 %v868_v0  ;;  %804 = vmatprep.subr.mxu1 %v868_v0 }
  0xfb   :  { %772 = vmatpush3.msra.mxu0 %v942_v7  ;;  %805 = vmatpush3.msra.mxu1 %v934_v5 }
  0xfc   :  { %773 = vmatprep.subr.mxu0 %v868_v0  ;;  %806 = vmatprep.subr.mxu1 %v868_v0 }
  0xfd   :  { %774 = vmatpush3.msra.mxu0 %v949_v8  ;;  %807 = vmatpush3.msra.mxu1 %v942_v7 }
  0xfe   :  { %775 = vmatprep.subr.mxu0 %v868_v0  ;;  %808 = vmatprep.subr.mxu1 %v868_v0 }
  0xff   :  { %776 = vmatpush3.msra.mxu0 %v958_v9  ;;  %809 = vmatpush3.msra.mxu1 %v949_v8 }
 0x100   :  { %777 = vmatprep.subr.mxu0 %v868_v0  ;;  %810 = vmatprep.subr.mxu1 %v868_v0 }
 0x101   :  { %778 = vmatpush3.msra.mxu0 %v967_v10  ;;  %811 = vmatpush3.msra.mxu1 %v958_v9 }
 0x102   :  { %779 = vmatprep.subr.mxu0 %v868_v0  ;;  %812 = vmatprep.subr.mxu1 %v868_v0 }
 0x103   :  { %780 = vmatpush3.msra.mxu0 %v976_v11  ;;  %813 = vmatpush3.msra.mxu1 %v967_v10 }
 0x104   :  { %781 = vmatprep.subr.mxu0 %v868_v0  ;;  %814 = vmatprep.subr.mxu1 %v868_v0 }
 0x105   :  { %782 = vmatpush3.msra.mxu0 %v985_v12  ;;  %815 = vmatpush3.msra.mxu1 %v976_v11 }
 0x106   :  { %783 = vmatprep.subr.mxu0 %v868_v0  ;;  %816 = vmatprep.subr.mxu1 %v868_v0 }
 0x107   :  { %784 = vmatpush3.msra.mxu0 %v994_v13  ;;  %817 = vmatpush3.msra.mxu1 %v985_v12 }
 0x108   :  { %785 = vmatprep.subr.mxu0 %v868_v0  ;;  %818 = vmatprep.subr.mxu1 %v868_v0 }
 0x109   :  { %786 = vmatpush3.msra.mxu0 %v1003_v14  ;;  %819 = vmatpush3.msra.mxu1 %v994_v13 }
 0x10a   :  { %787 = vmatprep.subr.mxu0 %v868_v0  ;;  %820 = vmatprep.subr.mxu1 %v868_v0 }
 0x10b   :  { %788 = vmatpush3.msra.mxu0 %v1012_v15  ;;  %821 = vmatpush3.msra.mxu1 %v1003_v14 }
 0x10c   :  { %789 = vmatprep.subr.mxu0 %v868_v0  ;;  %822 = vmatprep.subr.mxu1 %v868_v0 }
 0x10d   :  { %790 = vmatpush3.msra.mxu0 %v1021_v16  ;;  %823 = vmatpush3.msra.mxu1 %v1012_v15 }
 0x10e   :  { %791 = vmatprep.subr.mxu0 %v868_v0  ;;  %824 = vmatprep.subr.mxu1 %v868_v0 }
 0x10f   :  { %792 = vmatpush3.msra.mxu0 %v1030_v17  ;;  %825 = vmatpush3.msra.mxu1 %v1021_v16 }
 0x110   :  { %793 = vmatprep.subr.mxu0 %v868_v0  ;;  %826 = vmatprep.subr.mxu1 %v868_v0 }
 0x111   :  { %794 = vmatpush3.msra.mxu0 %v1051_v18  ;;  %827 = vmatpush3.msra.mxu1 %v1030_v17 }
 0x112   :  { %796 = vmatmul.mubr.f32.vlgmr.msra.gmra.mxu0 %v292_v34  ;;  %828 = vmatprep.subr.mxu1 %v868_v0 }
 0x113   :  { %829 = vmatpush3.msra.mxu1 %v1051_v18  ;;  %830 = vmatprep.mubr.msk.f32.mxu1 %vm869_vm0, %v868_v0 }
 0x114   :  { %831 = vmatmul.mubr.f32.vlgmr.msra.gmra.mxu1 %v293_v37 }
 0x1b2   :  { %v383_v39 = vpop.f32.mrf.mxu0 }
 0x1b3   :  { %v384_v40 = vadd.f32 %v624_v38, %v383_v39 }
 0x1b4   :  { %v727_v41 = vpop.f32.mrf.mxu0  ;;  %v453_v42 = vpop.f32.mrf.mxu1 }
 0x1b5   :  { %v454_v43 = vadd.f32 %v624_v38, %v453_v42 }
 0x1b6   :  { %v762_v44 = vpop.f32.mrf.mxu1 }
 0x1b7   :  { %598 = vrot.lane.b32.xlu0 %v454_v43, %s870_s7 }
 0x1d2   :  { %v523_v45 = vpop.f32.mrf.mxu0 }
 0x1d3   :  { %v524_v46 = vadd.f32 %v624_v38, %v523_v45 }
 0x1d4   :  { %v797_v47 = vpop.f32.mrf.mxu0  ;;  %v593_v48 = vpop.f32.mrf.mxu1 }
 0x1d5   :  { %v594_v49 = vadd.f32 %v624_v38, %v593_v48  ;;  %602 = vrot.lane.b32.xlu0 %v524_v46, %s871_s8 }
 0x1d6   :  { %v832_v0 = vpop.f32.mrf.mxu1 }
 0x1d7   :  { %606 = vrot.lane.b32.xlu1 %v594_v49, %s872_s9 }
 0x229   :  { %v599_v50 = vpop.permute.xlu0 %598 }
 0x22a   :  { %v610_v51 = vsel %vm609_vm1, %v384_v40, %v599_v50 }
 0x247   :  { %v603_v52 = vpop.permute.xlu0 %602 }
 0x248   :  { %v612_v53 = vsel %vm611_vm2, %v610_v51, %v603_v52 }
 0x249   :  { %v607_v54 = vpop.permute.xlu1 %606 }
 0x24a   :  { %v614_v55 = vsel %vm613_vm3, %v612_v53, %v607_v54 }
 0x24b   :  { %v615_v56 = vmul.f32 1.442695, %v614_v55 }
 0x24d   :  { %841 = vpow2.f32 %v615_v56 }
 0x25a   :  { %v842_v57 = vpop.eup %841 }
 0x25b   :  { %618 = vst.msk [vmem:[%s1153_s5] sm:$0xff] %vm617_vm4, %v842_v57 }
 0x25c   :  { %623 = vsyncpa [#allocation4], 1 }

</bundles_post_ra>
